<compile_context>
chip_gen: v7x
topology: tpu7x:2x2x1
jax: 0.10.0
libtpu: 0.0.40
codegen_flags: <defaults>
</compile_context>

<pallas_src>
import jax
import jax.numpy as jnp
from jax.experimental import pallas as pl
from jax.experimental.pallas import tpu as pltpu

FEAT_CH = 64          # feat_channels for UNetResNet34
FUSION_IN = 80        # proj_head1 input dim
LANE = 128            # TPU lane width
MAX_TN = 1024         # max point-tile (sublane) size


def _round_up(x, m):
    return ((x + m - 1) // m) * m


def _choose_tile(n):
    """Largest tile (<= MAX_TN, multiple of 8 sublanes) that still yields >= 2
    grid steps so v7x's two TensorCores both get work; floor at 8."""
    for tn in (1024, 512, 256, 128, 64, 32, 16, 8):
        if tn <= MAX_TN and pl.cdiv(n, tn) >= 2:
            return tn
    return 8


# --------------------------------------------------------------------------
# Fused projection / classification heads (one pallas_call).
# --------------------------------------------------------------------------
def _fused_head_kernel(f2d_ref, fus_ref, w1_ref, b1_ref, wfh_ref, bg_ref,
                       out_ref):
    # f32 tiles are DMA'd in; cast to bf16 on the VPU (hides under DMA).
    f2d = f2d_ref[...].astype(jnp.bfloat16)              # (TN, 64)
    fus = fus_ref[...].astype(jnp.bfloat16)              # (TN, 80)

    # proj_head1 + ReLU (MXU accumulates f32; bias/ReLU stay in f32 on VPU).
    h1 = jnp.dot(fus, w1_ref[...],
                 preferred_element_type=jnp.float32) + b1_ref[...]
    h1 = jnp.maximum(h1, 0.0).astype(jnp.bfloat16)        # (TN, 64)

    # Packed folded weights (128, OUT):
    #   rows [0:64]   map feats_2d -> [logit1 | logit2 | 0-pad]
    #   rows [64:128] map h1       -> [logit1 |   0    | 0-pad]
    wfh = wfh_ref[...]
    w_f = wfh[:FEAT_CH]
    w_h = wfh[FEAT_CH:]

    out = (jnp.dot(f2d, w_f, preferred_element_type=jnp.float32)
           + jnp.dot(h1, w_h, preferred_element_type=jnp.float32)
           + bg_ref[...])                                  # (TN, OUT) f32
    out_ref[...] = out.astype(out_ref.dtype)               # bf16 store


def prepare_params(raw_params, num_classes):
    """Fold cls_head1 through proj_head2, pack both heads into one lane-dense
    slab, and cast matmul weights to bf16.  Call ONCE per model (hoisted out
    of the forward pass)."""
    w1, b1, w2, b2, wc1, bc1, wc2, bc2 = [
        jnp.asarray(p, jnp.float32) for p in raw_params]

    w2a, w2b = w2[:FEAT_CH], w2[FEAT_CH:]
    # fold (f32):  logit1 = f2d @ (W2a@Wc1) + h1 @ (W2b@Wc1) + (b2@Wc1 + bc1)
    wa = w2a @ wc1                                         # (64, nc)
    wb = w2b @ wc1                                         # (64, nc)
    bf = b2 @ wc1 + bc1                                    # (1, nc)

    nc = num_classes
    if 2 * nc <= LANE:
        # Both heads share one 128-lane group: logit1 @ [0:nc], logit2 @ [nc:2nc].
        out_w, off2 = LANE, nc
        w_f = jnp.pad(jnp.concatenate([wa, wc2], axis=1),
                      ((0, 0), (0, out_w - 2 * nc)))       # (64, 128)
        w_h = jnp.pad(wb, ((0, 0), (0, out_w - nc)))        # (64, 128)
        bg = jnp.pad(jnp.concatenate([bf, bc2], axis=1),
                     ((0, 0), (0, out_w - 2 * nc)))          # (1, 128)
    else:
        # Fallback: each head lane-padded to a multiple of 128.
        ncp = _round_up(nc, LANE)
        out_w, off2 = 2 * ncp, ncp

        def lane_pad(m):
            return jnp.pad(m, ((0, 0), (0, ncp - m.shape[1])))

        w_f = jnp.concatenate([lane_pad(wa), lane_pad(wc2)], axis=1)
        w_h = jnp.concatenate(
            [lane_pad(wb), jnp.zeros((FEAT_CH, ncp), jnp.float32)], axis=1)
        bg = jnp.concatenate([lane_pad(bf), lane_pad(bc2)], axis=1)

    wfh = jnp.concatenate([w_f, w_h], axis=0).astype(jnp.bfloat16)  # (128, out_w)
    return {
        'w1': w1.astype(jnp.bfloat16),    # (80, 64)  bf16
        'b1': b1,                          # (1, 64)   f32
        'wfh': wfh,                        # (128, out_w) bf16
        'bg': bg,                          # (1, out_w)   f32
        'nc': nc,
        'off2': off2,
        'out_w': out_w,
    }


def fused_heads(feats_2d, fusion_feats, packed):
    """Run the fused heads on [N, C] point features; returns (logit1, logit2)."""
    w1, b1, wfh, bg = packed['w1'], packed['b1'], packed['wfh'], packed['bg']
    nc, off2, out_w = packed['nc'], packed['off2'], packed['out_w']
    n = feats_2d.shape[0]

    # TN is a grid-overhead / megacore-balance knob, not a VMEM constraint
    # (working set is a few MiB even at TN=1024 on v7x's 64 MiB VMEM).
    tn = _choose_tile(n)
    grid = (pl.cdiv(n, tn),)   # tail block (if any) is masked by Pallas

    out = pl.pallas_call(
        _fused_head_kernel,
        out_shape=jax.ShapeDtypeStruct((n, out_w), jnp.bfloat16),
        grid=grid,
        in_specs=[
            pl.BlockSpec((tn, FEAT_CH), lambda i: (i, 0)),     # feats_2d (f32)
            pl.BlockSpec((tn, FUSION_IN), lambda i: (i, 0)),   # fusion_feats (f32)
            pl.BlockSpec(w1.shape, lambda i: (0, 0)),          # W1  (80, 64)
            pl.BlockSpec(b1.shape, lambda i: (0, 0)),          # b1  (1, 64)
            pl.BlockSpec(wfh.shape, lambda i: (0, 0)),         # packed (128, out_w)
            pl.BlockSpec(bg.shape, lambda i: (0, 0)),          # packed bias
        ],
        out_specs=pl.BlockSpec((tn, out_w), lambda i: (i, 0)),
        compiler_params=pltpu.CompilerParams(
            dimension_semantics=("parallel",)),
    )(feats_2d, fusion_feats, w1, b1, wfh, bg)

    logit1 = out[:, :nc].astype(jnp.float32)
    logit2 = out[:, off2:off2 + nc].astype(jnp.float32)
    return logit1, logit2


# --------------------------------------------------------------------------
# Glue: per-point pixel gather without a full-map NCHW->NHWC transpose.
# --------------------------------------------------------------------------
def gather_point_feats(feats_full, img_indices):
    """Single gather on the pixel-flattened NCHW map (reads only the N points).

    TODO(synk): a channels-last backbone output would make each gathered
    C-vector contiguous and allow fusing the gather into the head kernel.
    """
    B, C, H, W = feats_full.shape
    pix = feats_full.reshape(B, C, H * W)
    b_idx = jnp.concatenate(
        [jnp.full((idx.shape[0],), i, jnp.int32) for i, idx in enumerate(img_indices)])
    p_idx = jnp.concatenate(
        [idx[:, 0] * W + idx[:, 1] for idx in img_indices])
    return pix[b_idx, :, p_idx]                            # (N, C) f32


def net2dseg_forward(data_batch, feats_full, fusion_feats, packed_params,
                     dual_head=True):
    """Pallas implementation of Net2DSeg.forward for the fusion branch.

    `packed_params` must come from prepare_params(raw_params, num_classes)
    (computed once per model, not per step)."""
    feats_2d = gather_point_feats(feats_full, data_batch['img_indices'])
    logit1, logit2 = fused_heads(feats_2d, fusion_feats, packed_params)
    preds = {'seg_logit': logit1}
    if dual_head:
        preds['seg_logit2'] = logit2
    return preds


# --------------------------------------------------------------------------
# Synthetic params + pure-JAX reference (original, un-folded f32 math,
# original permute-then-index gather) for validation.
# --------------------------------------------------------------------------
def init_params(key, num_classes):
    """PyTorch weights are [out, in]; we store them transposed as [in, out]."""
    ks = jax.random.split(key, 8)
    s = 0.02
    w1 = jax.random.normal(ks[0], (FUSION_IN, FEAT_CH), jnp.float32) * s
    b1 = jax.random.normal(ks[1], (1, FEAT_CH), jnp.float32) * s
    w2 = jax.random.normal(ks[2], (2 * FEAT_CH, FEAT_CH), jnp.float32) * s
    b2 = jax.random.normal(ks[3], (1, FEAT_CH), jnp.float32) * s
    wc1 = jax.random.normal(ks[4], (FEAT_CH, num_classes), jnp.float32) * s
    bc1 = jax.random.normal(ks[5], (1, num_classes), jnp.float32) * s
    wc2 = jax.random.normal(ks[6], (FEAT_CH, num_classes), jnp.float32) * s
    bc2 = jax.random.normal(ks[7], (1, num_classes), jnp.float32) * s
    return (w1, b1, w2, b2, wc1, bc1, wc2, bc2)


def reference_forward(feats_full, img_indices, fusion_feats, raw_params):
    w1, b1, w2, b2, wc1, bc1, wc2, bc2 = raw_params
    nhwc = jnp.transpose(feats_full, (0, 2, 3, 1))
    feats_2d = jnp.concatenate(
        [nhwc[i][idx[:, 0], idx[:, 1]] for i, idx in enumerate(img_indices)],
        axis=0)
    h1 = jnp.maximum(fusion_feats @ w1 + b1, 0.0)
    h2 = jnp.concatenate([feats_2d, h1], axis=1) @ w2 + b2
    return h2 @ wc1 + bc1, feats_2d @ wc2 + bc2


if __name__ == "__main__":
    num_classes = 10
    B, C, H, W = 2, FEAT_CH, 16, 16
    n_points = 64  # per image

    key = jax.random.PRNGKey(0)
    k_feat, k_fus, k_idx, k_par = jax.random.split(key, 4)

    feats_full = jax.random.normal(k_feat, (B, C, H, W), jnp.float32)
    img_indices = []
    for i in range(B):
        ki = jax.random.fold_in(k_idx, i)
        rows = jax.random.randint(ki, (n_points, 1), 0, H)
        cols = jax.random.randint(jax.random.fold_in(ki, 1), (n_points, 1), 0, W)
        img_indices.append(jnp.concatenate([rows, cols], axis=1))
    fusion_feats = jax.random.normal(k_fus, (B * n_points, FUSION_IN), jnp.float32)

    raw_params = init_params(k_par, num_classes)
    packed = prepare_params(raw_params, num_classes)   # once per model (hoisted)
    data_batch = {'img_indices': img_indices}

    preds = net2dseg_forward(data_batch, feats_full, fusion_feats, packed,
                             dual_head=True)
    jax.block_until_ready(preds['seg_logit'])
    jax.block_until_ready(preds['seg_logit2'])

    # correctness check against the pure-JAX (f32, un-folded, un-fused) reference
    ref1, ref2 = reference_forward(feats_full, img_indices, fusion_feats,
                                   raw_params)
    assert preds['seg_logit'].shape == (B * n_points, num_classes)
    assert preds['seg_logit2'].shape == (B * n_points, num_classes)
    # bf16 activations/weights/outputs + folded classifier -> relaxed tolerance
    assert jnp.allclose(preds['seg_logit'], ref1, atol=2e-2, rtol=5e-2)
    assert jnp.allclose(preds['seg_logit2'], ref2, atol=2e-2, rtol=5e-2)

    print("KERNEL_OK")
</pallas_src>

<mosaic_0001>
module attributes {stable_mosaic.version = 11 : i64} {
  func.func @_fused_head_kernel(%arg0: i32, %arg1: memref<64x64xf32, #tpu.memory_space<vmem>>, %arg2: memref<64x80xf32, #tpu.memory_space<vmem>>, %arg3: memref<80x64xbf16, #tpu.memory_space<vmem>>, %arg4: memref<1x64xf32, #tpu.memory_space<vmem>>, %arg5: memref<128x128xbf16, #tpu.memory_space<vmem>>, %arg6: memref<1x128xf32, #tpu.memory_space<vmem>>, %arg7: memref<64x128xbf16, #tpu.memory_space<vmem>>) attributes {dimension_semantics = [#tpu.dimension_semantics<parallel>], iteration_bounds = array<i64: 2>, scalar_prefetch = 0 : i64, scratch_operands = 0 : i64, tpu.core_type = #tpu.core_type<tc>, window_params = [{transform_indices = @transform_0, window_bounds = array<i64: 64, 64>}, {transform_indices = @transform_1, window_bounds = array<i64: 64, 80>}, {pipeline_mode = #tpu.pipeline_mode<synchronous>, transform_indices = @transform_2, window_bounds = array<i64: 80, 64>}, {pipeline_mode = #tpu.pipeline_mode<synchronous>, transform_indices = @transform_3, window_bounds = array<i64: 1, 64>}, {pipeline_mode = #tpu.pipeline_mode<synchronous>, transform_indices = @transform_4, window_bounds = array<i64: 128, 128>}, {pipeline_mode = #tpu.pipeline_mode<synchronous>, transform_indices = @transform_5, window_bounds = array<i64: 1, 128>}, {transform_indices = @transform_6, window_bounds = array<i64: 64, 128>}]} {
    %c0 = arith.constant 0 : index
    %c0_0 = arith.constant 0 : index
    %0 = vector.load %arg1[%c0, %c0_0] : memref<64x64xf32, #tpu.memory_space<vmem>>, vector<64x64xf32>
    %1 = arith.truncf %0 : vector<64x64xf32> to vector<64x64xbf16>
    %c0_1 = arith.constant 0 : index
    %c0_2 = arith.constant 0 : index
    %2 = vector.load %arg2[%c0_1, %c0_2] : memref<64x80xf32, #tpu.memory_space<vmem>>, vector<64x80xf32>
    %3 = arith.truncf %2 : vector<64x80xf32> to vector<64x80xbf16>
    %c0_3 = arith.constant 0 : index
    %c0_4 = arith.constant 0 : index
    %4 = vector.load %arg3[%c0_3, %c0_4] : memref<80x64xbf16, #tpu.memory_space<vmem>>, vector<80x64xbf16>
    %cst = arith.constant dense<0.000000e+00> : vector<64x64xf32>
    %5 = tpu.matmul %3, %4, %cst {dimension_numbers = #tpu.dot_dimension_numbers<[1], [0], [0], [1], [0, 0, 1, 1], [], []>} : vector<64x80xbf16>, vector<80x64xbf16>, vector<64x64xf32> -> vector<64x64xf32>
    %c0_5 = arith.constant 0 : index
    %c0_6 = arith.constant 0 : index
    %6 = vector.load %arg4[%c0_5, %c0_6] : memref<1x64xf32, #tpu.memory_space<vmem>>, vector<1x64xf32>
    %7 = vector.broadcast %6 : vector<1x64xf32> to vector<64x64xf32>
    %8 = arith.addf %5, %7 : vector<64x64xf32>
    %cst_7 = arith.constant 0.000000e+00 : f32
    %9 = vector.broadcast %cst_7 : f32 to vector<64x64xf32>
    %10 = arith.maximumf %8, %9 : vector<64x64xf32>
    %11 = arith.truncf %10 : vector<64x64xf32> to vector<64x64xbf16>
    %c0_8 = arith.constant 0 : index
    %c0_9 = arith.constant 0 : index
    %12 = vector.load %arg5[%c0_8, %c0_9] : memref<128x128xbf16, #tpu.memory_space<vmem>>, vector<128x128xbf16>
    %13 = vector.extract_strided_slice %12 {offsets = [0, 0], sizes = [64, 128], strides = [1, 1]} : vector<128x128xbf16> to vector<64x128xbf16>
    %14 = vector.extract_strided_slice %12 {offsets = [64, 0], sizes = [64, 128], strides = [1, 1]} : vector<128x128xbf16> to vector<64x128xbf16>
    %cst_10 = arith.constant dense<0.000000e+00> : vector<64x128xf32>
    %15 = tpu.matmul %1, %13, %cst_10 {dimension_numbers = #tpu.dot_dimension_numbers<[1], [0], [0], [1], [0, 0, 1, 1], [], []>} : vector<64x64xbf16>, vector<64x128xbf16>, vector<64x128xf32> -> vector<64x128xf32>
    %cst_11 = arith.constant dense<0.000000e+00> : vector<64x128xf32>
    %16 = tpu.matmul %11, %14, %cst_11 {dimension_numbers = #tpu.dot_dimension_numbers<[1], [0], [0], [1], [0, 0, 1, 1], [], []>} : vector<64x64xbf16>, vector<64x128xbf16>, vector<64x128xf32> -> vector<64x128xf32>
    %17 = arith.addf %15, %16 : vector<64x128xf32>
    %c0_12 = arith.constant 0 : index
    %c0_13 = arith.constant 0 : index
    %18 = vector.load %arg6[%c0_12, %c0_13] : memref<1x128xf32, #tpu.memory_space<vmem>>, vector<1x128xf32>
    %19 = vector.broadcast %18 : vector<1x128xf32> to vector<64x128xf32>
    %20 = arith.addf %17, %19 : vector<64x128xf32>
    %21 = arith.truncf %20 : vector<64x128xf32> to vector<64x128xbf16>
    %c0_14 = arith.constant 0 : index
    %c0_15 = arith.constant 0 : index
    %22 = vector.load %arg7[%c0_14, %c0_15] : memref<64x128xbf16, #tpu.memory_space<vmem>>, vector<64x128xbf16>
    tpu.vector_store %arg7[%c0_14, %c0_15], %21 {strides = array<i32>} : memref<64x128xbf16, #tpu.memory_space<vmem>>, vector<64x128xbf16>,
    return
  }
  func.func @transform_0(%arg0: i32) -> (i32, i32) {
    %c0_i32 = arith.constant 0 : i32
    %c0_i32_0 = arith.constant 0 : i32
    return %arg0, %c0_i32 : i32, i32
  }
  func.func @transform_1(%arg0: i32) -> (i32, i32) {
    %c0_i32 = arith.constant 0 : i32
    %c0_i32_0 = arith.constant 0 : i32
    return %arg0, %c0_i32 : i32, i32
  }
  func.func @transform_2(%arg0: i32) -> (i32, i32) {
    %c0_i32 = arith.constant 0 : i32
    %c0_i32_0 = arith.constant 0 : i32
    %c0_i32_1 = arith.constant 0 : i32
    return %c0_i32, %c0_i32_0 : i32, i32
  }
  func.func @transform_3(%arg0: i32) -> (i32, i32) {
    %c0_i32 = arith.constant 0 : i32
    %c0_i32_0 = arith.constant 0 : i32
    %c0_i32_1 = arith.constant 0 : i32
    return %c0_i32, %c0_i32_0 : i32, i32
  }
  func.func @transform_4(%arg0: i32) -> (i32, i32) {
    %c0_i32 = arith.constant 0 : i32
    %c0_i32_0 = arith.constant 0 : i32
    %c0_i32_1 = arith.constant 0 : i32
    return %c0_i32, %c0_i32_0 : i32, i32
  }
  func.func @transform_5(%arg0: i32) -> (i32, i32) {
    %c0_i32 = arith.constant 0 : i32
    %c0_i32_0 = arith.constant 0 : i32
    %c0_i32_1 = arith.constant 0 : i32
    return %c0_i32, %c0_i32_0 : i32, i32
  }
  func.func @transform_6(%arg0: i32) -> (i32, i32) {
    %c0_i32 = arith.constant 0 : i32
    %c0_i32_0 = arith.constant 0 : i32
    return %arg0, %c0_i32 : i32, i32
  }
}

</mosaic_0001>

<bundles_post_ra>
// kernel: tpu_custom_call.1
= control target key start
LH: loop header
LB: loop body
LE: loop exit
PB: predicated region body
PF: predicated region fallthrough
CT: control target
= control target key end

     0   :  { %11 = vsyncpa [#allocation3], 0  ;;  %s1332_s0 = inlined_call_operand.vmem [shape: f32[128,64], index: 0, kind: input, shape index: {}]   ;;  %s1333_s1 = inlined_call_operand.vmem [shape: f32[128,80], index: 1, kind: input, shape index: {}]   ;;  %s1334_s2 = inlined_call_operand.vmem [shape: bf16[80,64], index: 2, kind: input, shape index: {}]   ;;  %s1335_s3 = inlined_call_operand.vmem [shape: f32[1,64], index: 3, kind: input, shape index: {}]   ;;  %s1336_s4 = inlined_call_operand.vmem [shape: bf16[128,128], index: 4, kind: input, shape index: {}]   ;;  %s1337_s5 = inlined_call_operand.vmem [shape: f32[1,128], index: 5, kind: input, shape index: {}]   ;;  %s1338_s6 = inlined_call_operand.hbm [shape: bf16[128,128], index: 6, kind: output, shape index: {}]  }
   0x1   :  { %13 = vsyncpa [#allocation3 + $0x1], 0  ;;  %s1127_s21 = smov 0   ;;  %s1129_s22 = smov 0  }
   0x2   :  { %s1131_s23 = smov 0   ;;  %s1133_s24 = smov 0  }
   0x3 LB: > { %s1148_s25 = sadd.s32 4294967295, %s1087_s24   ;;  %s799_s26 = sadd.s32 4294967294, %s1087_s24   ;;  %s1087_s24 = sphi %s1133_s24, %s1344_s24   ;;  %s1083_s23 = sphi %s1131_s23, %s1343_s23   ;;  %s1079_s22 = sphi %s1129_s22, %s1342_s22   ;;  %s1075_s21 = sphi %s1127_s21, %s1341_s21  }
   0x4   : > { %s1152_s27 = sadd.s32 1, %s1087_s24   ;;  %s162_s28 = sadd.s32 1, %s1083_s23 }
   0x5   : > { %s159_s29 = ssub.s32 %s1087_s24, %s1152_s27  ;;  %p172_p0 = scmp.ne.s32.totalorder %s1083_s23, %s1079_s22 }
   0x6   : > { %p160_p1 = scmp.eq.s32.totalorder %s159_s29, 0  ;;  %p173_p2 = scmp.eq.s32.totalorder %s1148_s25, 1 }
   0x7   : > { %p178_p3 = scmp.ne.s32.totalorder %s1079_s22, %s1075_s21  ;;  %p179_p4 = scmp.eq.s32.totalorder %s799_s26, 1 }
   0x8   : > { %s1163_s30 = scalar_select %p160_p1, %s1083_s23, %s162_s28  }
   0x9   : > { %p1165_p5 = por %p173_p2, %p172_p0  ;;  %p1169_p6 = por %p179_p4, %p178_p3 }
   0xa   : > { %p802_p7 = scmp.ge.s32.totalorder %s1087_s24, 1  ;;  %p227_p8 = scmp.lt.s32.totalorder %s1087_s24, 3 }
   0xc   : > { %p228_p9 = pnand %p802_p7, %p227_p8 }
   0xd   : > { %v1012_v0 = vld [vmem:[%s1334_s2] sm:$0xff] (!%p228_p9)   ;;  %s804_s11 = sshll.u32 (!%p228_p9), %s1148_s25, 3  ;;  %v1013_v1 = vld [vmem:[%s1334_s2 + $0x8] sm:$0xff] (!%p228_p9)   ;;  %v1014_v2 = vld [vmem:[%s1334_s2 + $0x10] sm:$0xff] (!%p228_p9)   ;;  %vm347_vm0 = vcmask (!%p228_p9), 654336   ;;  %vm477_vm1 = vcmask (!%p228_p9), 523264  }
   0xe   : > { %231 = sbr.rel (%p228_p9) target bundleno = 510 (0x1fe), region = 44  ;;  %p263_p10 = scmp.lt.s32.totalorder (!%p228_p9), %s804_s11, 15  ;;  %905 = vmatprep.subr.bf16.mxu0 (!%p228_p9), %v1012_v0  ;;  %v1017_v3 = vld [vmem:[%s1336_s4 + $0x20] sm:$0xff] (!%p228_p9)   ;;  %v1015_v6 = vld [vmem:[%s1334_s2 + $0x18] sm:$0xff] (!%p228_p9)   ;;  %v1019_v8 = vld [vmem:[%s1336_s4 + $0x28] sm:$0xff] (!%p228_p9)  }
   0xf   : > { %906 = vmatpush3.bf16.msra.mxu0 (!%p228_p9), %v1012_v0  ;;  %923 = vmatprep.subr.bf16.mxu1 (!%p228_p9), %v1017_v3  ;;  %v1016_v9 = vld [vmem:[%s1334_s2 + $0x20] sm:$0xff] (!%p228_p9)   ;;  %v1223_v17 = vld [vmem:[%s1336_s4 + $0x8] sm:$0xff] (!%p228_p9)   ;;  %v1021_v21 = vld [vmem:[%s1336_s4 + $0x30] sm:$0xff] (!%p228_p9)   ;;  %s259_s17 = sand.u32 (!%p228_p9), 1, %s1079_s22   ;;  %s1089_s14 = smov (!%p228_p9), [#allocation2]  }
  0x10   : > { %907 = vmatprep.subr.bf16.mxu0 (!%p228_p9), %v1013_v1  ;;  %924 = vmatpush3.bf16.msra.mxu1 (!%p228_p9), %v1017_v3  ;;  %v1217_v14 = vld [vmem:[%s1336_s4] sm:$0xff] (!%p228_p9)   ;;  %v1022_v22 = vld [vmem:[%s1336_s4 + $0x10] sm:$0xff] (!%p228_p9)   ;;  %v1023_v23 = vld [vmem:[%s1336_s4 + $0x38] sm:$0xff] (!%p228_p9)   ;;  %s803_s20 = sshll.u32 (!%p228_p9), %s259_s17, 5  ;;  %s1029_s15 = sshll.u32 (!%p228_p9), %s1089_s14, 4  ;;  %s1030_s15 = int_to_ptr.vmem [resolvable:$false] %s1029_s15 }
  0x11   : > { %925 = vmatprep.subr.bf16.mxu1 (!%p228_p9), %v1019_v8  ;;  %v1024_v24 = vld [vmem:[%s1336_s4 + $0x18] sm:$0xff] (!%p228_p9)   ;;  %v808_v31 = vld [vmem:[%s1335_s3] ss:$0 sm:$0xff] (!%p228_p9)  ;;  %s261_s28 = scalar_lea.vmem (!%p228_p9), [#allocation2], %s803_s20 }
  0x12   : > { %s725_s29 = sshll.u32 (!%p228_p9), %s261_s28, 4  ;;  %s1282_s29 = int_to_ptr.vmem [resolvable:$true] %s725_s29 }
  0x13   : > { %908 = vmatpush3.bf16.msra.mxu0 (!%p228_p9), %v1013_v1  ;;  %s1025_s13 = scalar_lea.vmem (!%p228_p9), %s1282_s29, 512  ;;  %p1032_p0 = scmp.lt.s32.totalorder (!%p228_p9), %s1282_s29, %s1030_s15 }
  0x14   : > { %909 = vmatprep.subr.bf16.mxu0 (!%p228_p9), %v1014_v2  ;;  %926 = vmatpush3.bf16.msra.mxu1 (!%p228_p9), %v1019_v8  ;;  %p1026_p11 = scmp.ne.s32.totalorder (!%p228_p9), %s1282_s29, %s1025_s13 }
  0x15   : > { %s1346_s11 = smov (!%p263_p10, %s804_s11), 15  ;;  %927 = vmatprep.subr.bf16.mxu1 %v1021_v21 }
  0x16   : > { %s805_s16 = sshll.u32 %s1346_s11, 3  ;;  %p1027_p12 = pnand %p1026_p11, %p1165_p5 }
  0x17   : > { %s1196_s26 = scalar_lea.vmem %s1333_s1, %s805_s16  ;;  %910 = vmatpush3.bf16.msra.mxu0 %v1014_v2  ;;  %s1244_s10 = scalar_lea.vmem %s1332_s0, %s805_s16 }
  0x18   : > { %v288_v4 = vld [vmem:[%s1196_s26] sm:$0xff]  ;;  %v289_v5 = vld [vmem:[%s1196_s26 + $0x8] sm:$0xff]  ;;  %911 = vmatprep.subr.bf16.mxu0 %v1015_v6  ;;  %v290_v10 = vld [vmem:[%s1196_s26 + $0x10] sm:$0xff]  ;;  %928 = vmatpush3.bf16.msra.mxu1 %v1021_v21  ;;  %p1028_p13 = pneg %p1027_p12  ;;  %s1031_s11 = scalar_lea.vmem %s1030_s15, 1024 }
  0x19   : > { %v296_v7 = vpack.c.bf16 %v289_v5, %v288_v4  ;;  %v291_v11 = vld [vmem:[%s1196_s26 + $0x18] sm:$0xff]  ;;  %v292_v12 = vld [vmem:[%s1196_s26 + $0x20] sm:$0xff]  ;;  %v293_v13 = vld [vmem:[%s1196_s26 + $0x28] sm:$0xff]  ;;  %929 = vmatprep.subr.bf16.mxu1 %v1023_v23  ;;  %p1033_p1 = scmp.lt.s32.totalorder %s1031_s11, %s1025_s13 }
  0x1a   : > { %v297_v15 = vpack.c.bf16 %v291_v11, %v290_v10  ;;  %v298_v16 = vpack.c.bf16 %v293_v13, %v292_v12  ;;  %v294_v18 = vld [vmem:[%s1196_s26 + $0x30] sm:$0xff]  ;;  %v295_v19 = vld [vmem:[%s1196_s26 + $0x38] sm:$0xff]  ;;  %v276_v25 = vld [vmem:[%s1244_s10] sm:$0xff]  ;;  %s856_s26 = sshll.u32 %s1148_s25, 9  ;;  %s1291_s25 = scalar_lea.sflag [#allocation3], %s259_s17 }
  0x1b   : > { %915 = vmatprep.mubr.msk.bf16.mxu0 %vm347_vm0, %v296_v7  ;;  %912 = vmatpush3.bf16.msra.mxu0 %v1015_v6  ;;  %v299_v20 = vpack.c.bf16 %v295_v19, %v294_v18  ;;  %v277_v26 = vld [vmem:[%s1244_s10 + $0x8] sm:$0xff]  ;;  %v278_v28 = vld [vmem:[%s1244_s10 + $0x10] sm:$0xff]  ;;  %v279_v29 = vld [vmem:[%s1244_s10 + $0x18] sm:$0xff]  ;;  %s1287_s12 = scalar_lea.hbm %s1338_s6, %s856_s26  ;;  %p1034_p2 = por %p1033_p1, %p1032_p0 }
  0x1c   : > { %913 = vmatprep.subr.bf16.mxu0 %v1016_v9  ;;  %930 = vmatpush3.bf16.msra.mxu1 %v1023_v23  ;;  %v284_v27 = vpack.c.bf16 %v277_v26, %v276_v25  ;;  %v285_v30 = vpack.c.bf16 %v279_v29, %v278_v28  ;;  %v280_v56 = vld [vmem:[%s1244_s10 + $0x20] sm:$0xff]  ;;  %v281_v57 = vld [vmem:[%s1244_s10 + $0x28] sm:$0xff]  ;;  %v282_v63 = vld [vmem:[%s1244_s10 + $0x30] sm:$0xff] }
  0x1d   : > { %955 = vmatprep.subr.bf16.mxu1 %v1217_v14  ;;  %v286_v62 = vpack.c.bf16 %v281_v57, %v280_v56  ;;  %v283_v0 = vld [vmem:[%s1244_s10 + $0x38] sm:$0xff]  ;;  %p1035_p3 = pnand %p1034_p2, %p1028_p13 }
  0x1e   : > { %v287_v1 = vpack.c.bf16 %v283_v0, %v282_v63 }
  0x1f   : > { %914 = vmatpush3.bf16.msra.mxu0 %v1016_v9  ;;  %v834_v9 = vld [vmem:[%s1337_s5] ss:$0 sm:$0xff] }
  0x20   : > { %939 = vmatprep.subr.bf16.mxu0 %v1217_v14 }
  0x22   : > { %916 = vmatmul.mubr.msk.bf16.vlgmr.msra.gmra.mrb[0].mxu0 %vm347_vm0, %v297_v15 }
  0x23   : > { %919 = vmatprep.mubr.msk.bf16.mxu0 %vm347_vm0, %v298_v16  ;;  %940 = vmatpush3.bf16.msra.mxu0 %v1217_v14 }
  0x24   : > { %941 = vmatprep.subr.bf16.mxu0 %v1223_v17 }
  0x27   : > { %942 = vmatpush3.bf16.msra.mxu0 %v1223_v17 }
  0x28   : > { %943 = vmatprep.subr.bf16.mxu0 %v1022_v22 }
  0x2a   : > { %920 = vmatmul.mubr.msk.bf16.gmra.mrb[4].mxu0 %vm347_vm0, %v299_v20 }
  0x2b   : > { %944 = vmatpush3.bf16.msra.mxu0 %v1022_v22  ;;  %947 = vmatprep.mubr.msk.bf16.mxu0 %vm477_vm1, %v284_v27 }
  0x2c   : > { %945 = vmatprep.subr.bf16.mxu0 %v1024_v24 }
  0x2f   : > { %946 = vmatpush3.bf16.msra.mxu0 %v1024_v24 }
  0x32   : > { %948 = vmatmul.mubr.msk.bf16.vlgmr.msra.gmra.mrb[8].mxu0 %vm477_vm1, %v285_v30 }
  0xf5   : > { %v917_v32 = vpop.f32.mrb[0].mxu0 }
  0xf6   : > { %v403_v33 = vadd.f32 %v917_v32, %v808_v31  ;;  %v394_v34 = vpop.f32.mrb[1].mxu0 }
  0xf7   : > { %v395_v35 = vadd.f32 %v808_v31, %v394_v34  ;;  %v918_v36 = vpop.f32.mrb[2].mxu0 }
  0xf8   : > { %v406_v37 = vadd.f32 %v918_v36, %v808_v31  ;;  %v397_v38 = vpop.f32.mrb[3].mxu0  ;;  %v427_v40 = vmax.f32 %v403_v33, 0.0 }
  0xf9   : > { %v398_v39 = vadd.f32 %v808_v31, %v397_v38  ;;  %v425_v42 = vmax.f32 %v395_v35, 0.0 }
  0xfa   : > { %v428_v41 = vmax.f32 %v406_v37, 0.0 }
  0xfb   : > { %v426_v43 = vmax.f32 %v398_v39, 0.0 }
  0xfc   : > { %v434_v44 = vpack.c.bf16 %v428_v41, %v427_v40 }
  0xfd   : > { %v921_v45 = vpop.f32.mrb[4].mxu0  ;;  %v433_v46 = vpack.c.bf16 %v426_v43, %v425_v42 }
  0xfe   : > { %v419_v47 = vadd.f32 %v921_v45, %v808_v31  ;;  %v410_v48 = vpop.f32.mrb[5].mxu0 }
  0xff   : > { %v411_v49 = vadd.f32 %v808_v31, %v410_v48  ;;  %v922_v50 = vpop.f32.mrb[6].mxu0  ;;  %931 = vmatprep.mubr.msk.bf16.mxu1 %vm477_vm1, %v433_v46 }
 0x100   : > { %v422_v51 = vadd.f32 %v922_v50, %v808_v31  ;;  %v413_v52 = vpop.f32.mrb[7].mxu0  ;;  %932 = vmatmul.mubr.msk.bf16.vlgmr.msra.gmra.mrb[0].mxu1 %vm477_vm1, %v434_v44  ;;  %v431_v54 = vmax.f32 %v419_v47, 0.0 }
 0x101   : > { %v414_v53 = vadd.f32 %v808_v31, %v413_v52  ;;  %959 = vmatpush3.bf16.msra.mxu1 %v1217_v14  ;;  %v429_v58 = vmax.f32 %v411_v49, 0.0 }
 0x102   : > { %v432_v55 = vmax.f32 %v422_v51, 0.0  ;;  %956 = vmatprep.subr.bf16.mxu1 %v1223_v17 }
 0x103   : > { %v430_v59 = vmax.f32 %v414_v53, 0.0 }
 0x104   : > { %v436_v60 = vpack.c.bf16 %v432_v55, %v431_v54 }
 0x105   : > { %v435_v61 = vpack.c.bf16 %v430_v59, %v429_v58  ;;  %960 = vmatpush3.bf16.msra.mxu1 %v1223_v17  ;;  %v949_v2 = vpop.f32.mrb[8].mxu0 }
 0x106   : > { %957 = vmatprep.subr.bf16.mxu1 %v1022_v22  ;;  %v625_v3 = vpop.f32.mrb[9].mxu0 }
 0x107   : > { %935 = vmatprep.mubr.msk.bf16.mxu1 %vm477_vm1, %v435_v61  ;;  %v950_v4 = vpop.f32.mrb[10].mxu0 }
 0x108   : > { %936 = vmatmul.mubr.msk.bf16.gmra.mrb[4].mxu1 %vm477_vm1, %v436_v60  ;;  %v628_v5 = vpop.f32.mrb[11].mxu0 }
 0x109   : > { %961 = vmatpush3.bf16.msra.mxu1 %v1022_v22  ;;  %951 = vmatprep.mubr.msk.bf16.mxu1 %vm477_vm1, %v286_v62 }
 0x10a   : > { %958 = vmatprep.subr.bf16.mxu1 %v1024_v24 }
 0x10d   : > { %962 = vmatpush3.bf16.msra.mxu1 %v1024_v24 }
 0x114   : > { %952 = vmatmul.mubr.msk.bf16.vlgmr.msra.gmra.mrb[4].mxu1 %vm477_vm1, %v287_v1 }
 0x1d3   : > { %v933_v6 = vpop.f32.mrb[0].mxu1 }
 0x1d4   : > { %v634_v7 = vadd.f32 %v949_v2, %v933_v6  ;;  %v524_v8 = vpop.f32.mrb[1].mxu1 }
 0x1d5   : > { %v626_v10 = vadd.f32 %v625_v3, %v524_v8  ;;  %v934_v11 = vpop.f32.mrb[2].mxu1 }
 0x1d6   : > { %v637_v12 = vadd.f32 %v950_v4, %v934_v11  ;;  %v527_v13 = vpop.f32.mrb[3].mxu1  ;;  %v665_v15 = vadd.f32 %v834_v9, %v634_v7 }
 0x1d7   : > { %v629_v14 = vadd.f32 %v628_v5, %v527_v13  ;;  %v663_v17 = vadd.f32 %v834_v9, %v626_v10 }
 0x1d8   : > { %v666_v16 = vadd.f32 %v834_v9, %v637_v12 }
 0x1d9   : > { %v664_v18 = vadd.f32 %v834_v9, %v629_v14 }
 0x1da   : > { %v865_v19 = vpack.c.bf16 %v666_v16, %v665_v15 }
 0x1db   : > { %v860_v20 = vpack.c.bf16 %v664_v18, %v663_v17 }
 0x1dc   : > { %877 = vst [vmem:[%s261_s28 + $0x8] sm:$0xff] %v865_v19  }
 0x1dd   : > { %861 = vst [vmem:[%s261_s28] sm:$0xff] %v860_v20  }
 0x1e7   : > { %v953_v21 = vpop.f32.mrb[4].mxu1 }
 0x1e8   : > { %v641_v22 = vpop.f32.mrb[5].mxu1  ;;  %v669_v24 = vadd.f32 %v953_v21, %v834_v9 }
 0x1e9   : > { %v954_v23 = vpop.f32.mrb[6].mxu1  ;;  %v667_v27 = vadd.f32 %v834_v9, %v641_v22 }
 0x1ea   : > { %v670_v25 = vadd.f32 %v954_v23, %v834_v9  ;;  %v644_v26 = vpop.f32.mrb[7].mxu1 }
 0x1eb   : > { %v668_v28 = vadd.f32 %v834_v9, %v644_v26 }
 0x1ec   : > { %v875_v29 = vpack.c.bf16 %v670_v25, %v669_v24 }
 0x1ed   : > { %v870_v30 = vpack.c.bf16 %v668_v28, %v667_v27 }
 0x1ee   : > { %879 = vst [vmem:[%s261_s28 + $0x18] sm:$0xff] %v875_v29  }
 0x1ef   : > { %878 = vst [vmem:[%s261_s28 + $0x10] sm:$0xff] %v870_v30  }
 0x1f0   : > { %1038 = shalt.err (!%p1035_p3)
}
 0x1f1   : > { %s1039_s16 = scalar_lea.hbm %s1287_s12, 512  ;;  %s1043_s19 = scalar_lea.hbm %s1338_s6, 1024 }
 0x1f2   : > { %p1040_p4 = scmp.ne.s32.totalorder %s1287_s12, %s1039_s16  ;;  %p1044_p9 = scmp.lt.u32.totalorder %s1287_s12, %s1338_s6 }
 0x1f3   : > { %p1045_p10 = scmp.lt.u32.totalorder %s1043_s19, %s1039_s16  ;;  %p1047_p12 = scmp.lt.u32.totalorder %s1039_s16, %s1287_s12 }
 0x1f4   : > { %p1041_p7 = pnand %p1040_p4, %p1165_p5 }
 0x1f5   : > { %p1046_p11 = por %p1045_p10, %p1044_p9 }
 0x1f6   : > { %p1042_p8 = pneg %p1041_p7 }
 0x1f7   : > { %p1048_p13 = por %p1047_p12, %p1046_p11 }
 0x1f9   : > { %p1049_p0 = pnand %p1048_p13, %p1042_p8 }
 0x1fb   : > { %1052 = shalt.err (!%p1049_p0)
}
 0x1fc   : > { %s1090_s26 = smov 64   ;;  %s1091_s9 = smov 4  }
 0x1fd   : > { %971 = dma.vmem_to_hbm [thread:$0]  (%p1165_p5), %s1282_s29, 512, %s1287_s12, %s1291_s25, %s1090_s26, %s1090_s26, %s1091_s9  }
 0x1fe PF: > { %p977_p1 = scmp.ge.s32.totalorder %s1087_s24, 2  ;;  %s740_s10 = sand.u32 1, %s1075_s21  }
 0x1ff   : > { %s741_s13 = scalar_lea.sflag [#allocation3], %s740_s10 }
 0x200   : > { %p974_p2 = pnand %p977_p1, %p1169_p6 }
 0x202   : > { %1070 = dma.done.wait (!%p974_p2), %s741_s13, 512  }
 0x203   : > { %1072 = vsyncadd (!%p974_p2), %s741_s13, 4294966784  ;;  %p16_p3 = scmp.ge.s32.totalorder %s1152_s27, 4   ;;  %s1341_s21 = smov %s1079_s22 }
 0x204   : > { %s1342_s22 = smov %s1083_s23  ;;  %s1343_s23 = smov %s1163_s30 }
 0x205   : > { %s1344_s24 = smov %s1152_s27  ;;  %18 = sbr.rel (!%p16_p3) target bundleno = 3 (0x3), region = 82 }
 0x20c   :  { %746 = vsyncpa [#allocation3], 1 }
 0x20d   :  { %748 = vsyncpa [#allocation3 + $0x1], 1 }

</bundles_post_ra>
